<compile_context>
chip_gen: v7x
topology: tpu7x:2x2x1
jax: 0.10.0
libtpu: 0.0.40
codegen_flags: <defaults>
</compile_context>

<pallas_src>
import math

import jax
import jax.numpy as jnp
from jax.experimental import pallas as pl
from jax.experimental.pallas import tpu as pltpu


def film_node_kernel(nodes_ref, t_ref, w1n_ref, w1t_ref, b1_ref, w2_ref,
                     b2_ref, out_ref):
    # nodes_ref : (tm, d_model) f32     t_ref  : (tm, d_t) f32
    # w1n_ref   : (d_model, d_hidden) bf16   w1t_ref : (d_t, d_hidden) bf16
    # b1_ref    : (1, d_hidden) f32
    # w2_ref    : (d_hidden, 2*d_model) bf16  b2_ref : (1, 2*d_model) f32
    nodes_f32 = nodes_ref[...].astype(jnp.float32)

    # First linear with the W1 split (condition = cat([nodes, t]) implicitly):
    # bf16 operands on the MXU, f32 accumulation.
    h = (jnp.dot(nodes_ref[...].astype(jnp.bfloat16), w1n_ref[...],
                 preferred_element_type=jnp.float32)
         + jnp.dot(t_ref[...].astype(jnp.bfloat16), w1t_ref[...],
                   preferred_element_type=jnp.float32)
         + b1_ref[...])
    # SiLU in f32 (v5e has no bf16 VPU/EUP path).
    h = h * jax.nn.sigmoid(h)
    h_bf = h.astype(jnp.bfloat16)

    d_model = out_ref.shape[-1]
    if d_model >= 256:
        # Split second matmul: halves the peak f32 intermediate (VMEM headroom
        # on v7x); the kernel is mem-bound so the narrower MXU N costs nothing.
        gamma = (jnp.dot(h_bf, w2_ref[:, :d_model],
                         preferred_element_type=jnp.float32)
                 + b2_ref[:, :d_model])
        beta = (jnp.dot(h_bf, w2_ref[:, d_model:],
                        preferred_element_type=jnp.float32)
                + b2_ref[:, d_model:])
    else:
        # d_model == 128: fused 2*d_model-wide dot fills the 256-wide MXU on
        # v6e/v7x; gamma/beta slices are lane-aligned (d_model % 128 == 0).
        gb = (jnp.dot(h_bf, w2_ref[...], preferred_element_type=jnp.float32)
              + b2_ref[...])
        gamma = gb[:, :d_model]
        beta = gb[:, d_model:]

    # Modulation with the un-quantized f32 nodes.
    out_ref[...] = (gamma * nodes_f32 + beta).astype(out_ref.dtype)


def _round_up(x, m):
    return (x + m - 1) // m * m


def _choose_tm(M, tm_target):
    # Never tile beyond the (8-aligned) problem size.
    tm = min(tm_target, _round_up(M, 8))
    # Once the problem is big enough, aim for >= 4 grid steps so
    # dimension_semantics=("parallel",) can feed both v7x TensorCores and the
    # double-buffer pipeline has room.  128-aligned tiles (v5e MXU is 128 wide;
    # 256-alignment buys nothing there).
    if M >= 4 * 128:
        tm = min(tm, max(128, (M // 4) // 128 * 128))
    return tm


def film_node_pallas(nodes, t_emb, w1, b1, w2, b2, *, tm=512, out_dtype=None):
    """FiLM_Node forward with condition = cat([nodes, t_emb], -1) kept implicit.

    nodes : [..., d_model]            t_emb : [..., d_t]   (same leading dims)
    w1    : [d_model + d_t, d_hidden]  b1   : [d_hidden]
    w2    : [d_hidden, 2 * d_model]    b2   : [2 * d_model]
    """
    lead = nodes.shape[:-1]
    d_model = nodes.shape[-1]
    d_t = t_emb.shape[-1]
    d_hidden = w1.shape[-1]
    d_out = w2.shape[-1]
    assert t_emb.shape[:-1] == lead
    assert w1.shape[0] == d_model + d_t and w2.shape[0] == d_hidden
    assert b1.size == d_hidden and b2.size == d_out
    assert d_out == 2 * d_model
    # gamma/beta slicing of gb is only copy-free when d_model is lane-aligned.
    assert d_model % 128 == 0, "d_model must be a multiple of 128"

    if out_dtype is None:
        # Keep module semantics (same dtype as nodes).  Pass out_dtype=bf16 to
        # halve writeback bytes if the downstream UNet stage tolerates it.
        out_dtype = nodes.dtype

    M = math.prod(lead) if lead else 1
    tm_eff = _choose_tm(M, tm)
    grid = (pl.cdiv(M, tm_eff),)  # ragged last block: masked stores, no padding

    nodes2d = nodes.reshape(M, d_model)
    t2d = t_emb.reshape(M, d_t)

    # Weight/bias casts (cheap; weights are small).
    # TODO(synk): hoist these casts to once per UNet forward when wiring into
    # the full model so they are not repeated at every FiLM call.
    w1n = w1[:d_model].astype(jnp.bfloat16)
    w1t = w1[d_model:].astype(jnp.bfloat16)
    w2b = w2.astype(jnp.bfloat16)
    b1f = b1.reshape(1, d_hidden).astype(jnp.float32)
    b2f = b2.reshape(1, d_out).astype(jnp.float32)

    # VMEM budget: double-buffered activations & output, weights/biases
    # (double-buffered BlockSpec allocation, DMA'd once), in-kernel bf16 casts,
    # f32 h / gb / modulation temporaries, plus a margin for Mosaic scratch.
    in_b = jnp.dtype(nodes.dtype).itemsize
    t_b = jnp.dtype(t_emb.dtype).itemsize
    out_b = jnp.dtype(out_dtype).itemsize
    est = (2 * tm_eff * d_model * in_b                       # nodes in
           + 2 * tm_eff * d_t * t_b                          # t in
           + 2 * tm_eff * d_model * out_b                    # out
           + 2 * ((d_model + d_t) * d_hidden + d_hidden * d_out) * 2  # bf16 W
           + 2 * (d_hidden + d_out) * 4                      # f32 biases
           + tm_eff * (d_model + d_t + d_hidden) * 2         # bf16 casts
           + tm_eff * (d_hidden + d_out + d_model) * 4)      # f32 temporaries
    vmem_limit = int(min(56 * 2 ** 20,
                         max(32 * 2 ** 20, 2 * est + (4 << 20))))

    grid_spec = pltpu.PrefetchScalarGridSpec(
        num_scalar_prefetch=0,
        grid=grid,
        in_specs=[
            pl.BlockSpec((tm_eff, d_model), lambda i: (i, 0)),   # nodes rows
            pl.BlockSpec((tm_eff, d_t), lambda i: (i, 0)),       # t rows
            pl.BlockSpec((d_model, d_hidden), lambda i: (0, 0)),  # W1_nodes
            pl.BlockSpec((d_t, d_hidden), lambda i: (0, 0)),      # W1_t
            pl.BlockSpec((1, d_hidden), lambda i: (0, 0)),        # b1
            pl.BlockSpec((d_hidden, d_out), lambda i: (0, 0)),    # W2
            pl.BlockSpec((1, d_out), lambda i: (0, 0)),           # b2
        ],
        out_specs=pl.BlockSpec((tm_eff, d_model), lambda i: (i, 0)),
    )

    out = pl.pallas_call(
        film_node_kernel,
        out_shape=jax.ShapeDtypeStruct((M, d_model), out_dtype),
        grid_spec=grid_spec,
        compiler_params=pltpu.CompilerParams(
            dimension_semantics=("parallel",),
            vmem_limit_bytes=vmem_limit),
    )(nodes2d, t2d, w1n, w1t, b1f, w2b, b2f)

    return out.reshape(*lead, d_model)


def film_node_reference(nodes, t_emb, w1, b1, w2, b2, *,
                        match_kernel_precision=False):
    f32 = jnp.float32
    dot = lambda a, b: jnp.dot(a, b, precision=jax.lax.Precision.HIGHEST)
    if match_kernel_precision:
        q = lambda x: x.astype(jnp.bfloat16).astype(f32)
    else:
        q = lambda x: x.astype(f32)
    cond = jnp.concatenate([nodes, t_emb], axis=-1)
    h = dot(q(cond), q(w1)) + b1.astype(f32)
    h = h * jax.nn.sigmoid(h)
    if match_kernel_precision:
        h = q(h)
    gb = dot(h, q(w2)) + b2.astype(f32)
    d_model = nodes.shape[-1]
    gamma, beta = gb[..., :d_model], gb[..., d_model:]
    return (gamma * nodes.astype(f32) + beta).astype(nodes.dtype)


if __name__ == "__main__":
    # Shapes mirroring the UNet forward prologue for FiLM_Node:
    #   nodes: (Z, N, d_model) -> (Z*N, d_model); condition = cat([nodes, t])
    Z, N = 2, 8
    d_model = 128
    d_hidden = d_model
    d_t = d_model                       # -> d_condition = 2 * d_model
    d_condition = d_model + d_t

    key = jax.random.PRNGKey(0)
    k_nodes, k_t, k_w1, k_b1, k_w2, k_b2, k_big = jax.random.split(key, 7)

    nodes = jax.random.normal(k_nodes, (Z, N, d_model), dtype=jnp.float32)
    nodes2d = nodes.reshape(Z * N, d_model)
    t_emb = jax.random.normal(k_t, (Z * N, d_t), dtype=jnp.float32)

    # PyTorch-Linear-style uniform init.
    lim1 = 1.0 / (d_condition ** 0.5)
    lim2 = 1.0 / (d_hidden ** 0.5)
    w1 = jax.random.uniform(k_w1, (d_condition, d_hidden), jnp.float32, -lim1, lim1)
    b1 = jax.random.uniform(k_b1, (d_hidden,), jnp.float32, -lim1, lim1)
    w2 = jax.random.uniform(k_w2, (d_hidden, 2 * d_model), jnp.float32, -lim2, lim2)
    b2 = jax.random.uniform(k_b2, (2 * d_model,), jnp.float32, -lim2, lim2)

    out = film_node_pallas(nodes2d, t_emb, w1, b1, w2, b2)
    jax.block_until_ready(out)
    assert out.shape == (Z * N, d_model) and out.dtype == nodes2d.dtype

    # Tight check against a reference applying the same bf16 matmul-operand
    # quantization; loose sanity check against the pure-f32 reference.
    ref_bf = film_node_reference(nodes2d, t_emb, w1, b1, w2, b2,
                                 match_kernel_precision=True)
    ref_f32 = film_node_reference(nodes2d, t_emb, w1, b1, w2, b2,
                                  match_kernel_precision=False)
    assert jnp.allclose(out, ref_bf, atol=2e-3, rtol=2e-3)
    assert jnp.allclose(out, ref_f32, atol=1e-1, rtol=5e-2)

    # Ragged-M case (grid > 1, masked last block) exercising the pad-free path.
    M_big = 600
    nodes_big = jax.random.normal(k_big, (M_big, d_model), dtype=jnp.float32)
    t_big = jax.random.normal(jax.random.fold_in(k_big, 1), (M_big, d_t),
                              dtype=jnp.float32)
    out_big = film_node_pallas(nodes_big, t_big, w1, b1, w2, b2)
    jax.block_until_ready(out_big)
    assert out_big.shape == (M_big, d_model)
    ref_big = film_node_reference(nodes_big, t_big, w1, b1, w2, b2,
                                  match_kernel_precision=True)
    assert jnp.allclose(out_big, ref_big, atol=2e-3, rtol=2e-3)

    print("KERNEL_OK")
</pallas_src>

<mosaic_0001>
module attributes {stable_mosaic.version = 11 : i64} {
  func.func @film_node_kernel(%arg0: i32, %arg1: memref<16x128xf32, #tpu.memory_space<vmem>>, %arg2: memref<16x128xf32, #tpu.memory_space<vmem>>, %arg3: memref<128x128xbf16, #tpu.memory_space<vmem>>, %arg4: memref<128x128xbf16, #tpu.memory_space<vmem>>, %arg5: memref<1x128xf32, #tpu.memory_space<vmem>>, %arg6: memref<128x256xbf16, #tpu.memory_space<vmem>>, %arg7: memref<1x256xf32, #tpu.memory_space<vmem>>, %arg8: memref<16x128xf32, #tpu.memory_space<vmem>>) attributes {dimension_semantics = [#tpu.dimension_semantics<parallel>], iteration_bounds = array<i64: 1>, scalar_prefetch = 0 : i64, scratch_operands = 0 : i64, tpu.core_type = #tpu.core_type<tc>, window_params = [{transform_indices = @transform_0, window_bounds = array<i64: 16, 128>}, {transform_indices = @transform_1, window_bounds = array<i64: 16, 128>}, {pipeline_mode = #tpu.pipeline_mode<synchronous>, transform_indices = @transform_2, window_bounds = array<i64: 128, 128>}, {pipeline_mode = #tpu.pipeline_mode<synchronous>, transform_indices = @transform_3, window_bounds = array<i64: 128, 128>}, {pipeline_mode = #tpu.pipeline_mode<synchronous>, transform_indices = @transform_4, window_bounds = array<i64: 1, 128>}, {pipeline_mode = #tpu.pipeline_mode<synchronous>, transform_indices = @transform_5, window_bounds = array<i64: 128, 256>}, {pipeline_mode = #tpu.pipeline_mode<synchronous>, transform_indices = @transform_6, window_bounds = array<i64: 1, 256>}, {transform_indices = @transform_7, window_bounds = array<i64: 16, 128>}]} {
    %c0 = arith.constant 0 : index
    %c0_0 = arith.constant 0 : index
    %0 = vector.load %arg1[%c0, %c0_0] : memref<16x128xf32, #tpu.memory_space<vmem>>, vector<16x128xf32>
    %c0_1 = arith.constant 0 : index
    %c0_2 = arith.constant 0 : index
    %1 = vector.load %arg1[%c0_1, %c0_2] : memref<16x128xf32, #tpu.memory_space<vmem>>, vector<16x128xf32>
    %2 = arith.truncf %1 : vector<16x128xf32> to vector<16x128xbf16>
    %c0_3 = arith.constant 0 : index
    %c0_4 = arith.constant 0 : index
    %3 = vector.load %arg3[%c0_3, %c0_4] : memref<128x128xbf16, #tpu.memory_space<vmem>>, vector<128x128xbf16>
    %cst = arith.constant dense<0.000000e+00> : vector<16x128xf32>
    %4 = tpu.matmul %2, %3, %cst {dimension_numbers = #tpu.dot_dimension_numbers<[1], [0], [0], [1], [0, 0, 1, 1], [], []>} : vector<16x128xbf16>, vector<128x128xbf16>, vector<16x128xf32> -> vector<16x128xf32>
    %c0_5 = arith.constant 0 : index
    %c0_6 = arith.constant 0 : index
    %5 = vector.load %arg2[%c0_5, %c0_6] : memref<16x128xf32, #tpu.memory_space<vmem>>, vector<16x128xf32>
    %6 = arith.truncf %5 : vector<16x128xf32> to vector<16x128xbf16>
    %c0_7 = arith.constant 0 : index
    %c0_8 = arith.constant 0 : index
    %7 = vector.load %arg4[%c0_7, %c0_8] : memref<128x128xbf16, #tpu.memory_space<vmem>>, vector<128x128xbf16>
    %cst_9 = arith.constant dense<0.000000e+00> : vector<16x128xf32>
    %8 = tpu.matmul %6, %7, %cst_9 {dimension_numbers = #tpu.dot_dimension_numbers<[1], [0], [0], [1], [0, 0, 1, 1], [], []>} : vector<16x128xbf16>, vector<128x128xbf16>, vector<16x128xf32> -> vector<16x128xf32>
    %9 = arith.addf %4, %8 : vector<16x128xf32>
    %c0_10 = arith.constant 0 : index
    %c0_11 = arith.constant 0 : index
    %10 = vector.load %arg5[%c0_10, %c0_11] : memref<1x128xf32, #tpu.memory_space<vmem>>, vector<1x128xf32>
    %11 = vector.broadcast %10 : vector<1x128xf32> to vector<16x128xf32>
    %12 = arith.addf %9, %11 : vector<16x128xf32>
    %13 = arith.negf %12 : vector<16x128xf32>
    %14 = math.exp %13 : vector<16x128xf32>
    %cst_12 = arith.constant 1.000000e+00 : f32
    %15 = vector.broadcast %cst_12 : f32 to vector<16x128xf32>
    %16 = arith.addf %15, %14 : vector<16x128xf32>
    %17 = arith.divf %15, %16 : vector<16x128xf32>
    %18 = arith.mulf %12, %17 : vector<16x128xf32>
    %19 = arith.truncf %18 : vector<16x128xf32> to vector<16x128xbf16>
    %c0_13 = arith.constant 0 : index
    %c0_14 = arith.constant 0 : index
    %20 = vector.load %arg6[%c0_13, %c0_14] : memref<128x256xbf16, #tpu.memory_space<vmem>>, vector<128x256xbf16>
    %cst_15 = arith.constant dense<0.000000e+00> : vector<16x256xf32>
    %21 = tpu.matmul %19, %20, %cst_15 {dimension_numbers = #tpu.dot_dimension_numbers<[1], [0], [0], [1], [0, 0, 1, 1], [], []>} : vector<16x128xbf16>, vector<128x256xbf16>, vector<16x256xf32> -> vector<16x256xf32>
    %c0_16 = arith.constant 0 : index
    %c0_17 = arith.constant 0 : index
    %22 = vector.load %arg7[%c0_16, %c0_17] : memref<1x256xf32, #tpu.memory_space<vmem>>, vector<1x256xf32>
    %23 = vector.broadcast %22 : vector<1x256xf32> to vector<16x256xf32>
    %24 = arith.addf %21, %23 : vector<16x256xf32>
    %25 = vector.extract_strided_slice %24 {offsets = [0, 0], sizes = [16, 128], strides = [1, 1]} : vector<16x256xf32> to vector<16x128xf32>
    %26 = vector.extract_strided_slice %24 {offsets = [0, 128], sizes = [16, 128], strides = [1, 1]} : vector<16x256xf32> to vector<16x128xf32>
    %27 = arith.mulf %25, %0 : vector<16x128xf32>
    %28 = arith.addf %27, %26 : vector<16x128xf32>
    %c0_18 = arith.constant 0 : index
    %c0_19 = arith.constant 0 : index
    %29 = vector.load %arg8[%c0_18, %c0_19] : memref<16x128xf32, #tpu.memory_space<vmem>>, vector<16x128xf32>
    tpu.vector_store %arg8[%c0_18, %c0_19], %28 {strides = array<i32>} : memref<16x128xf32, #tpu.memory_space<vmem>>, vector<16x128xf32>,
    return
  }
  func.func @transform_0(%arg0: i32) -> (i32, i32) {
    %c0_i32 = arith.constant 0 : i32
    %c0_i32_0 = arith.constant 0 : i32
    return %arg0, %c0_i32 : i32, i32
  }
  func.func @transform_1(%arg0: i32) -> (i32, i32) {
    %c0_i32 = arith.constant 0 : i32
    %c0_i32_0 = arith.constant 0 : i32
    return %arg0, %c0_i32 : i32, i32
  }
  func.func @transform_2(%arg0: i32) -> (i32, i32) {
    %c0_i32 = arith.constant 0 : i32
    %c0_i32_0 = arith.constant 0 : i32
    %c0_i32_1 = arith.constant 0 : i32
    return %c0_i32, %c0_i32_0 : i32, i32
  }
  func.func @transform_3(%arg0: i32) -> (i32, i32) {
    %c0_i32 = arith.constant 0 : i32
    %c0_i32_0 = arith.constant 0 : i32
    %c0_i32_1 = arith.constant 0 : i32
    return %c0_i32, %c0_i32_0 : i32, i32
  }
  func.func @transform_4(%arg0: i32) -> (i32, i32) {
    %c0_i32 = arith.constant 0 : i32
    %c0_i32_0 = arith.constant 0 : i32
    %c0_i32_1 = arith.constant 0 : i32
    return %c0_i32, %c0_i32_0 : i32, i32
  }
  func.func @transform_5(%arg0: i32) -> (i32, i32) {
    %c0_i32 = arith.constant 0 : i32
    %c0_i32_0 = arith.constant 0 : i32
    %c0_i32_1 = arith.constant 0 : i32
    return %c0_i32, %c0_i32_0 : i32, i32
  }
  func.func @transform_6(%arg0: i32) -> (i32, i32) {
    %c0_i32 = arith.constant 0 : i32
    %c0_i32_0 = arith.constant 0 : i32
    %c0_i32_1 = arith.constant 0 : i32
    return %c0_i32, %c0_i32_0 : i32, i32
  }
  func.func @transform_7(%arg0: i32) -> (i32, i32) {
    %c0_i32 = arith.constant 0 : i32
    %c0_i32_0 = arith.constant 0 : i32
    return %arg0, %c0_i32 : i32, i32
  }
}

</mosaic_0001>

<bundles_post_ra>
// kernel: tpu_custom_call.1
= control target key start
LH: loop header
LB: loop body
LE: loop exit
PB: predicated region body
PF: predicated region fallthrough
CT: control target
= control target key end

     0   :  { %12 = vsyncpa [#allocation3], 0  ;;  %s963_s0 = inlined_call_operand.hbm [shape: f32[16,128], index: 0, kind: input, shape index: {}]   ;;  %s964_s1 = inlined_call_operand.hbm [shape: f32[16,128], index: 1, kind: input, shape index: {}]   ;;  %s965_s2 = inlined_call_operand.hbm [shape: bf16[128,128], index: 2, kind: input, shape index: {}]   ;;  %s966_s3 = inlined_call_operand.hbm [shape: bf16[128,128], index: 3, kind: input, shape index: {}]   ;;  %s967_s4 = inlined_call_operand.vmem [shape: f32[1,128], index: 4, kind: input, shape index: {}]   ;;  %s968_s5 = inlined_call_operand.hbm [shape: bf16[128,256], index: 5, kind: input, shape index: {}]   ;;  %s969_s6 = inlined_call_operand.vmem [shape: f32[1,256], index: 6, kind: input, shape index: {}]   ;;  %s970_s7 = inlined_call_operand.hbm [shape: f32[16,128], index: 7, kind: output, shape index: {}]  }
   0x1   :  { %13 = vsyncpa [#allocation6], 0 }
   0x2   :  { %14 = vsyncpa [#allocation9], 0 }
   0x3   :  { %15 = vsyncpa [#allocation4], 0  ;;  %s806_s24 = smov [#allocation5]   ;;  %s666_s28 = scalar_lea.hbm %s964_s1, 256 }
   0x4   :  { %s33_s25 = sshll.u32 %s806_s24, 4  ;;  %p667_p0 = scmp.ne.s32.totalorder %s964_s1, %s666_s28  ;;  %s34_s25 = int_to_ptr.vmem [resolvable:$true] %s33_s25 }
   0x5   :  { %p670_p1 = scmp.lt.u32.totalorder %s666_s28, %s964_s1 }
   0x7   :  { %p672_p2 = pnand %p670_p1, %p667_p0 }
   0x9   :  { %675 = shalt.err (!%p672_p2)
}
   0xa   :  { %s676_s10 = scalar_lea.vmem %s34_s25, 256  ;;  %p681_p4 = scmp.lt.s32.totalorder %s34_s25, %s34_s25 }
   0xb   :  { %p677_p3 = scmp.ne.s32.totalorder %s34_s25, %s676_s10  ;;  %p682_p5 = scmp.lt.s32.totalorder %s676_s10, %s676_s10 }
   0xd   :  { %p683_p6 = por %p682_p5, %p681_p4 }
   0xf   :  { %p684_p7 = pnand %p683_p6, %p677_p3 }
  0x11   :  { %687 = shalt.err (!%p684_p7)
}
  0x12   :  { %s807_s11 = smov 128   ;;  %s808_s12 = smov 8  }
  0x13   :  { %39 = dma.hbm_to_vmem [thread:$0]  %s964_s1, 256, %s34_s25, [#allocation6], %s807_s11, %s807_s11, %s808_s12  }
  0x14   :  { %s809_s15 = smov [#allocation8]   ;;  %s810_s17 = smov [#allocation2]  }
  0x15   :  { %s57_s16 = sshll.u32 %s809_s15, 4  ;;  %s21_s18 = sshll.u32 %s810_s17, 4  ;;  %s58_s16 = int_to_ptr.vmem [resolvable:$true] %s57_s16  ;;  %s22_s18 = int_to_ptr.vmem [resolvable:$true] %s21_s18 }
  0x16   :  { %s688_s21 = scalar_lea.hbm %s966_s3, 1024 }
  0x17   :  { %p689_p8 = scmp.ne.s32.totalorder %s966_s3, %s688_s21  ;;  %p692_p9 = scmp.lt.u32.totalorder %s688_s21, %s966_s3 }
  0x19   :  { %p694_p10 = pnand %p692_p9, %p689_p8 }
  0x1b   :  { %697 = shalt.err (!%p694_p10)
}
  0x1c   :  { %s698_s1 = scalar_lea.vmem %s58_s16, 1024  ;;  %p703_p12 = scmp.lt.s32.totalorder %s58_s16, %s58_s16 }
  0x1d   :  { %p699_p11 = scmp.ne.s32.totalorder %s58_s16, %s698_s1  ;;  %p704_p13 = scmp.lt.s32.totalorder %s698_s1, %s698_s1 }
  0x1f   :  { %p705_p0 = por %p704_p13, %p703_p12 }
  0x21   :  { %p706_p1 = pnand %p705_p0, %p699_p11 }
  0x23   :  { %709 = shalt.err (!%p706_p1)
}
  0x24   :  { %s811_s25 = smov 64   ;;  %s812_s27 = smov 4  }
  0x25   :  { %63 = dma.hbm_to_vmem [thread:$0]  %s966_s3, 1024, %s58_s16, [#allocation9], %s811_s25, %s811_s25, %s812_s27  }
  0x26   :  { %s710_s9 = scalar_lea.hbm %s963_s0, 256 }
  0x27   :  { %p711_p2 = scmp.ne.s32.totalorder %s963_s0, %s710_s9  ;;  %p714_p3 = scmp.lt.u32.totalorder %s710_s9, %s963_s0 }
  0x29   :  { %p716_p4 = pnand %p714_p3, %p711_p2 }
  0x2b   :  { %719 = shalt.err (!%p716_p4)
}
  0x2c   :  { %s720_s17 = scalar_lea.vmem %s22_s18, 256  ;;  %p725_p6 = scmp.lt.s32.totalorder %s22_s18, %s22_s18 }
  0x2d   :  { %p721_p5 = scmp.ne.s32.totalorder %s22_s18, %s720_s17  ;;  %p726_p7 = scmp.lt.s32.totalorder %s720_s17, %s720_s17 }
  0x2f   :  { %p727_p8 = por %p726_p7, %p725_p6 }
  0x31   :  { %p728_p9 = pnand %p727_p8, %p721_p5 }
  0x33   :  { %731 = shalt.err (!%p728_p9)
}
  0x34   :  { %27 = dma.hbm_to_vmem [thread:$0]  %s963_s0, 256, %s22_s18, [#allocation3], %s807_s11, %s807_s11, %s808_s12  }
  0x35   :  { %s813_s19 = smov [#allocation7]   ;;  %s814_s21 = smov [#allocation10]  }
  0x36   :  { %s45_s20 = sshll.u32 %s813_s19, 4  ;;  %s71_s22 = sshll.u32 %s814_s21, 4  ;;  %s46_s20 = int_to_ptr.vmem [resolvable:$true] %s45_s20  ;;  %s72_s22 = int_to_ptr.vmem [resolvable:$true] %s71_s22 }
  0x37   :  { %s732_s26 = scalar_lea.hbm %s965_s2, 1024 }
  0x38   :  { %p733_p10 = scmp.ne.s32.totalorder %s965_s2, %s732_s26  ;;  %p736_p11 = scmp.lt.u32.totalorder %s732_s26, %s965_s2 }
  0x3a   :  { %p738_p12 = pnand %p736_p11, %p733_p10 }
  0x3c   :  { %741 = shalt.err (!%p738_p12)
}
  0x3d   :  { %s742_s0 = scalar_lea.vmem %s46_s20, 1024  ;;  %p747_p0 = scmp.lt.s32.totalorder %s46_s20, %s46_s20 }
  0x3e   :  { %p743_p13 = scmp.ne.s32.totalorder %s46_s20, %s742_s0  ;;  %p748_p1 = scmp.lt.s32.totalorder %s742_s0, %s742_s0 }
  0x40   :  { %p749_p2 = por %p748_p1, %p747_p0 }
  0x42   :  { %p750_p3 = pnand %p749_p2, %p743_p13 }
  0x44   :  { %753 = shalt.err (!%p750_p3)
}
  0x45   :  { %51 = dma.hbm_to_vmem [thread:$0]  %s965_s2, 1024, %s46_s20, [#allocation6], %s811_s25, %s811_s25, %s812_s27  }
  0x46   :  { %s754_s13 = scalar_lea.hbm %s968_s5, 2048 }
  0x47   :  { %p755_p4 = scmp.ne.s32.totalorder %s968_s5, %s754_s13  ;;  %p758_p5 = scmp.lt.u32.totalorder %s754_s13, %s968_s5 }
  0x49   :  { %p760_p6 = pnand %p758_p5, %p755_p4 }
  0x4b   :  { %763 = shalt.err (!%p760_p6)
}
  0x4c   :  { %s764_s16 = scalar_lea.vmem %s72_s22, 2048  ;;  %p769_p8 = scmp.lt.s32.totalorder %s72_s22, %s72_s22 }
  0x4d   :  { %p765_p7 = scmp.ne.s32.totalorder %s72_s22, %s764_s16  ;;  %p770_p9 = scmp.lt.s32.totalorder %s764_s16, %s764_s16 }
  0x4f   :  { %p771_p10 = por %p770_p9, %p769_p8 }
  0x51   :  { %p772_p11 = pnand %p771_p10, %p765_p7 }
  0x53   :  { %775 = shalt.err (!%p772_p11)
}
  0x54   :  { %77 = dma.hbm_to_vmem [thread:$0]  %s968_s5, 2048, %s72_s22, [#allocation9], %s807_s11, %s807_s11, %s808_s12  }
  0x55   :  { %798 = dma.done.wait [#allocation3], 256  }
  0x56   :  { %799 = vsyncadd [#allocation3], 4294967040 }
  0x57   :  { %800 = dma.done.wait [#allocation6], 1280  }
  0x58   :  { %801 = vsyncadd [#allocation6], 4294966016 }
  0x59   :  { %802 = dma.done.wait [#allocation9], 3072  }
  0x5a   :  { %803 = vsyncadd [#allocation9], 4294964224  ;;  %v815_v0 = vmov 0.0   ;;  %vm816_vm0 = vmmov 0   ;;  %v618_v1 = vld [vmem:[#allocation8] sm:$0xff]   ;;  %v620_v3 = vld [vmem:[#allocation8 + $0x8] sm:$0xff]  }
  0x5b   :  { %565 = vmatprep.subr.bf16.mxu0 %v815_v0  ;;  %585 = vmatprep.subr.bf16.mxu1 %v815_v0  ;;  %v619_v2 = vld [vmem:[#allocation7] sm:$0xff]   ;;  %v621_v4 = vld [vmem:[#allocation7 + $0x8] sm:$0xff]   ;;  %v622_v5 = vld [vmem:[#allocation8 + $0x10] sm:$0xff]   ;;  %v817_v39 = vmov 0   ;;  %s818_s20 = smov [#allocation11]  }
  0x5c   :  { %581 = vmatprep.mubr.msk.bf16.mxu0 %vm816_vm0, %v815_v0  ;;  %601 = vmatprep.mubr.msk.bf16.mxu1 %vm816_vm0, %v815_v0  ;;  %v623_v6 = vld [vmem:[#allocation7 + $0x10] sm:$0xff]   ;;  %v624_v7 = vld [vmem:[#allocation8 + $0x18] sm:$0xff]   ;;  %v626_v9 = vld [vmem:[#allocation8 + $0x20] sm:$0xff]   ;;  %s498_s21 = sshll.u32 %s818_s20, 4  ;;  %s499_s21 = int_to_ptr.vmem [resolvable:$true] %s498_s21 }
  0x5d   :  { %566 = vmatpush3.bf16.msra.mxu0 %v618_v1  ;;  %586 = vmatpush3.bf16.msra.mxu1 %v619_v2  ;;  %v625_v8 = vld [vmem:[#allocation7 + $0x18] sm:$0xff]   ;;  %v627_v10 = vld [vmem:[#allocation7 + $0x20] sm:$0xff]   ;;  %v628_v11 = vld [vmem:[#allocation8 + $0x28] sm:$0xff]   ;;  %p781_p13 = scmp.lt.s32.totalorder %s499_s21, %s499_s21 }
  0x5e   :  { %567 = vmatprep.subr.bf16.mxu0 %v815_v0  ;;  %587 = vmatprep.subr.bf16.mxu1 %v815_v0  ;;  %v629_v12 = vld [vmem:[#allocation7 + $0x28] sm:$0xff]   ;;  %v630_v13 = vld [vmem:[#allocation8 + $0x30] sm:$0xff]   ;;  %v632_v15 = vld [vmem:[#allocation8 + $0x38] sm:$0xff]  }
  0x5f   :  { %v631_v14 = vld [vmem:[#allocation7 + $0x30] sm:$0xff]   ;;  %v116_v17 = vld [vmem:[#allocation5 + $0x8] sm:$0xff]  ;;  %v934_v19 = vld [vmem:[#allocation2] sm:$0xff] }
  0x60   :  { %v115_v16 = vld [vmem:[#allocation5] sm:$0xff]  ;;  %v633_v18 = vld [vmem:[#allocation7 + $0x38] sm:$0xff]   ;;  %v936_v20 = vld [vmem:[#allocation2 + $0x8] sm:$0xff] }
  0x61   :  { %568 = vmatpush3.bf16.msra.mxu0 %v620_v3  ;;  %588 = vmatpush3.bf16.msra.mxu1 %v621_v4  ;;  %v117_v21 = vpack.c.bf16 %v116_v17, %v115_v16  ;;  %v98_v22 = vpack.c.bf16 %v936_v20, %v934_v19  ;;  %v636_v23 = vld [vmem:[#allocation10 + $0x4] ss:$8 sps:$4 sm:$0xff]   ;;  %v634_v24 = vld [vmem:[#allocation10] ss:$8 sps:$4 sm:$0xff]   ;;  %v639_v25 = vld [vmem:[#allocation10 + $0x14] ss:$8 sps:$4 sm:$0xff]  }
  0x62   :  { %569 = vmatprep.subr.bf16.mxu0 %v815_v0  ;;  %589 = vmatprep.subr.bf16.mxu1 %v815_v0  ;;  %v637_v26 = vld [vmem:[#allocation10 + $0x10] ss:$8 sps:$4 sm:$0xff]   ;;  %v642_v27 = vld [vmem:[#allocation10 + $0x24] ss:$8 sps:$4 sm:$0xff]   ;;  %v640_v28 = vld [vmem:[#allocation10 + $0x20] ss:$8 sps:$4 sm:$0xff]  }
  0x63   :  { %v645_v29 = vld [vmem:[#allocation10 + $0x34] ss:$8 sps:$4 sm:$0xff]   ;;  %v643_v30 = vld [vmem:[#allocation10 + $0x30] ss:$8 sps:$4 sm:$0xff]   ;;  %v648_v31 = vld [vmem:[#allocation10 + $0x44] ss:$8 sps:$4 sm:$0xff]  }
  0x64   :  { %v646_v32 = vld [vmem:[#allocation10 + $0x40] ss:$8 sps:$4 sm:$0xff]   ;;  %v651_v33 = vld [vmem:[#allocation10 + $0x54] ss:$8 sps:$4 sm:$0xff]   ;;  %v649_v34 = vld [vmem:[#allocation10 + $0x50] ss:$8 sps:$4 sm:$0xff]  }
  0x65   :  { %570 = vmatpush3.bf16.msra.mxu0 %v622_v5  ;;  %590 = vmatpush3.bf16.msra.mxu1 %v623_v6  ;;  %v654_v35 = vld [vmem:[#allocation10 + $0x64] ss:$8 sps:$4 sm:$0xff]   ;;  %v652_v36 = vld [vmem:[#allocation10 + $0x60] ss:$8 sps:$4 sm:$0xff]   ;;  %v657_v37 = vld [vmem:[#allocation10 + $0x74] ss:$8 sps:$4 sm:$0xff]  }
  0x66   :  { %571 = vmatprep.subr.bf16.mxu0 %v815_v0  ;;  %591 = vmatprep.subr.bf16.mxu1 %v815_v0  ;;  %v655_v38 = vld [vmem:[#allocation10 + $0x70] ss:$8 sps:$4 sm:$0xff]   ;;  %v528_v42 = vld [vmem:[%s967_s4] ss:$0 sm:$0xff] }
  0x67   :  { %v352_v3 = vld [vmem:[%s969_s6] sm:$0x3]  ;;  %s776_s6 = scalar_lea.vmem %s499_s21, 256 }
  0x68   :  { %p777_p12 = scmp.ne.s32.totalorder %s499_s21, %s776_s6  ;;  %p782_p0 = scmp.lt.s32.totalorder %s776_s6, %s776_s6 }
  0x69   :  { %572 = vmatpush3.bf16.msra.mxu0 %v624_v7  ;;  %592 = vmatpush3.bf16.msra.mxu1 %v625_v8 }
  0x6a   :  { %573 = vmatprep.subr.bf16.mxu0 %v815_v0  ;;  %593 = vmatprep.subr.bf16.mxu1 %v815_v0  ;;  %p783_p1 = por %p782_p0, %p781_p13 }
  0x6c   :  { %p784_p2 = pnand %p783_p1, %p777_p12 }
  0x6d   :  { %574 = vmatpush3.bf16.msra.mxu0 %v626_v9  ;;  %594 = vmatpush3.bf16.msra.mxu1 %v627_v10 }
  0x6e   :  { %575 = vmatprep.subr.bf16.mxu0 %v815_v0  ;;  %595 = vmatprep.subr.bf16.mxu1 %v815_v0 }
  0x71   :  { %576 = vmatpush3.bf16.msra.mxu0 %v628_v11  ;;  %596 = vmatpush3.bf16.msra.mxu1 %v629_v12 }
  0x72   :  { %577 = vmatprep.subr.bf16.mxu0 %v815_v0  ;;  %597 = vmatprep.subr.bf16.mxu1 %v815_v0 }
  0x75   :  { %578 = vmatpush3.bf16.msra.mxu0 %v630_v13  ;;  %598 = vmatpush3.bf16.msra.mxu1 %v631_v14 }
  0x76   :  { %579 = vmatprep.subr.bf16.mxu0 %v815_v0  ;;  %599 = vmatprep.subr.bf16.mxu1 %v815_v0  ;;  %v354_v0 = vlaneseq }
  0x78   :  { %v355_v1 = vshrl.u32 %v354_v0, 7 }
  0x79   :  { %580 = vmatpush3.bf16.msra.mxu0 %v632_v15  ;;  %600 = vmatpush3.bf16.msra.mxu1 %v633_v18 }
  0x7a   :  { %444 = vmatprep.subr.bf16.mxu0 %v636_v23  ;;  %v356_v2 = vsub.s32 0, %v355_v1  ;;  %v360_v4 = vsub.s32 1, %v355_v1 }
  0x7c   :  { %582 = vmatmul.mubr.bf16.vlgmr.msra.gmra.mrb[0].mxu0 %v117_v21  ;;  %602 = vmatmul.mubr.bf16.vlgmr.msra.gmra.mrb[0].mxu1 %v98_v22  ;;  %v357_v5 = vrot.slane %v352_v3, %v356_v2  ;;  %v361_v6 = vrot.slane %v352_v3, %v360_v4 }
  0x7d   :  { %445 = vmatpush1.bf16.msra.mxu0 %v634_v24  ;;  %476 = vmatprep.mubr.bf16.mxu0 %v817_v39 }
  0x7e   :  { %446 = vmatprep.subr.bf16.mxu0 %v639_v25 }
  0x81   :  { %447 = vmatpush1.bf16.msra.mxu0 %v637_v26 }
  0x82   :  { %448 = vmatprep.subr.bf16.mxu0 %v642_v27 }
  0x85   :  { %449 = vmatpush1.bf16.msra.mxu0 %v640_v28 }
  0x86   :  { %450 = vmatprep.subr.bf16.mxu0 %v645_v29 }
  0x89   :  { %451 = vmatpush1.bf16.msra.mxu0 %v643_v30 }
  0x8a   :  { %452 = vmatprep.subr.bf16.mxu0 %v648_v31 }
  0x8d   :  { %453 = vmatpush1.bf16.msra.mxu0 %v646_v32 }
  0x8e   :  { %454 = vmatprep.subr.bf16.mxu0 %v651_v33 }
  0x91   :  { %455 = vmatpush1.bf16.msra.mxu0 %v649_v34 }
  0x92   :  { %456 = vmatprep.subr.bf16.mxu0 %v654_v35 }
  0x95   :  { %457 = vmatpush1.bf16.msra.mxu0 %v652_v36 }
  0x96   :  { %458 = vmatprep.subr.bf16.mxu0 %v657_v37 }
  0x99   :  { %459 = vmatpush1.bf16.msra.mxu0 %v655_v38 }
 0x14f   :  { %v216_v40 = vpop.f32.mrb[0].mxu0  ;;  %v305_v41 = vpop.f32.mrb[0].mxu1 }
 0x150   :  { %v583_v43 = vpop.f32.mrb[1].mxu0  ;;  %v306_v44 = vadd.f32 %v305_v41, %v216_v40  ;;  %v603_v45 = vpop.f32.mrb[1].mxu1 }
 0x151   :  { %v219_v46 = vpop.f32.mrb[2].mxu0  ;;  %v308_v47 = vpop.f32.mrb[2].mxu1 }
 0x152   :  { %v584_v48 = vpop.f32.mrb[3].mxu0  ;;  %v319_v49 = vadd.f32 %v528_v42, %v306_v44  ;;  %v309_v50 = vadd.f32 %v308_v47, %v219_v46  ;;  %v604_v51 = vpop.f32.mrb[3].mxu1 }
 0x154   :  { %v529_v52 = vmul.f32 -1.442695, %v319_v49  ;;  %v320_v53 = vadd.f32 %v528_v42, %v309_v50 }
 0x156   :  { %658 = vpow2.f32 %v529_v52  ;;  %v530_v54 = vmul.f32 -1.442695, %v320_v53 }
 0x158   :  { %660 = vpow2.f32 %v530_v54 }
 0x160   :  { %v659_v55 = vpop.eup %658 }
 0x161   :  { %v327_v56 = vadd.f32 1.0, %v659_v55 }
 0x162   :  { %v661_v57 = vpop.eup %660 }
 0x163   :  { %662 = vrcp.f32 %v327_v56  ;;  %v328_v58 = vadd.f32 1.0, %v661_v57 }
 0x165   :  { %664 = vrcp.f32 %v328_v58 }
 0x16d   :  { %v663_v59 = vpop.eup %662 }
 0x16e   :  { %v333_v61 = vmul.f32 %v663_v59, %v319_v49 }
 0x16f   :  { %v665_v60 = vpop.eup %664 }
 0x170   :  { %v334_v62 = vmul.f32 %v665_v60, %v320_v53 }
 0x172   :  { %v335_v63 = vpack.c.bf16 %v334_v62, %v333_v61 }
 0x174   :  { %477 = vmatmul.mubr.bf16.vlgmr.msra.gmra.mrb[4].mxu0 %v335_v63 }
 0x247   :  { %v478_v7 = vpop.f32.mrb[4].mxu0 }
 0x248   :  { %v479_v8 = vadd.f32 %v478_v7, %v357_v5  ;;  %v480_v9 = vpop.f32.mrb[5].mxu0 }
 0x249   :  { %v481_v10 = vadd.f32 %v480_v9, %v361_v6  ;;  %v482_v11 = vpop.f32.mrb[6].mxu0 }
 0x24a   :  { %v487_v12 = vmul.f32 %v479_v8, %v934_v19  ;;  %v483_v13 = vadd.f32 %v482_v11, %v357_v5  ;;  %v484_v14 = vpop.f32.mrb[7].mxu0 }
 0x24b   :  { %v485_v15 = vadd.f32 %v484_v14, %v361_v6 }
 0x24c   :  { %v489_v16 = vadd.f32 %v487_v12, %v481_v10  ;;  %v488_v17 = vmul.f32 %v483_v13, %v936_v20 }
 0x24e   :  { %491 = vst [vmem:[#allocation11] sm:$0xff] %v489_v16  ;;  %v490_v18 = vadd.f32 %v488_v17, %v485_v15 }
 0x250   :  { %492 = vst [vmem:[#allocation11 + $0x8] sm:$0xff] %v490_v18 }
 0x251   :  { %787 = shalt.err (!%p784_p2)
}
 0x252   :  { %s788_s24 = scalar_lea.hbm %s970_s7, 256 }
 0x253   :  { %p789_p3 = scmp.ne.s32.totalorder %s970_s7, %s788_s24  ;;  %p792_p4 = scmp.lt.u32.totalorder %s788_s24, %s970_s7 }
 0x255   :  { %p794_p5 = pnand %p792_p4, %p789_p3 }
 0x257   :  { %797 = shalt.err (!%p794_p5)
}
 0x258   :  { %504 = dma.vmem_to_hbm [thread:$0]  %s499_s21, 256, %s970_s7, [#allocation4], %s807_s11, %s807_s11, %s808_s12  }
 0x259   :  { %804 = dma.done.wait [#allocation4], 256  }
 0x25a   :  { %805 = vsyncadd [#allocation4], 4294967040 }
 0x25b   :  { %508 = vsyncpa [#allocation3], 1 }
 0x25c   :  { %509 = vsyncpa [#allocation6], 1 }
 0x25d   :  { %510 = vsyncpa [#allocation9], 1 }
 0x25e   :  { %511 = vsyncpa [#allocation4], 1 }

</bundles_post_ra>
